<compile_context>
chip_gen: v6e
topology: v6e:2x2x1
jax: 0.10.0
libtpu: 0.0.40
codegen_flags: <defaults>
</compile_context>

<pallas_src>
import functools

import jax
import jax.numpy as jnp
from jax.experimental import pallas as pl
from jax.experimental.pallas import tpu as pltpu

LANE = 128          # lane width (last dim)
SUBLANE_BF16 = 16   # bf16 packs 16 sublanes per vreg


def _round_up(x, m):
    return ((x + m - 1) // m) * m


# ----------------------------- Pallas kernel -------------------------------- #
def _mlp_fused_kernel(*refs, num_layers):
    # refs = (x_ref, w0, b0, w1, b1, ..., w_{L-1}, b_{L-1}, o_ref)
    x_ref = refs[0]
    o_ref = refs[1 + 2 * num_layers]

    h = x_ref[...]                                          # bf16 (tile_rows, D0p)
    for l in range(num_layers):                             # static layer loop
        w_ref = refs[1 + 2 * l]
        b_ref = refs[2 + 2 * l]
        acc = jnp.dot(h, w_ref[...], preferred_element_type=jnp.float32)  # MXU
        acc = acc + b_ref[...]                              # f32 epilogue (VPU)
        if l < num_layers - 1:
            acc = jnp.maximum(acc, 0.0)                     # ReLU (BN folded away)
            h = acc.astype(jnp.bfloat16)                    # back to bf16 for MXU
        else:
            o_ref[...] = acc.astype(o_ref.dtype)


# --------------------------- one-time param prep ----------------------------- #
def fold_bn_into_next_linear(lins, bns, eps=1e-5):
    """Fold eval-mode BN (applied after ReLU of layer i) into linear layer i+1."""
    ws = [w for (w, _) in lins]
    bs = [b for (_, b) in lins]
    for i, (gamma, beta, mean, var) in enumerate(bns):
        scale = gamma * jax.lax.rsqrt(var + eps)
        shift = beta - mean * scale
        w_next = ws[i + 1]
        bs[i + 1] = bs[i + 1] + shift @ w_next              # uses original W
        ws[i + 1] = scale[:, None] * w_next
    return ws, bs


def prepare_mlp_params(lins, bns, eps=1e-5):
    """BN fold + lane padding + bf16 cast, done ONCE (not per forward call)."""
    ws, bs = fold_bn_into_next_linear(lins, bns, eps=eps)
    dims = [lins[0][0].shape[0]] + [w.shape[1] for w in ws]
    dims_pad = [_round_up(d, LANE) for d in dims]           # lane-dense features
    ws_p, bs_p = [], []
    for l in range(len(ws)):
        di, do = dims[l], dims[l + 1]
        dip, dop = dims_pad[l], dims_pad[l + 1]
        ws_p.append(jnp.pad(ws[l].astype(jnp.bfloat16), ((0, dip - di), (0, dop - do))))
        bs_p.append(jnp.pad(bs[l].astype(jnp.float32)[None, :], ((0, 0), (0, dop - do))))
    return ws_p, bs_p, tuple(dims), tuple(dims_pad)


# ------------------------------ forward factory ------------------------------ #
def make_mlp_forward(lins, bns, *, eps=1e-5, out_dtype=jnp.float32,
                     single_buffer_weights=True):
    ws_p, bs_p, dims, dims_pad = prepare_mlp_params(lins, bns, eps=eps)
    num_layers = len(ws_p)
    weight_bytes = sum(int(w.size) * 2 for w in ws_p) + sum(int(b.size) * 4 for b in bs_p)

    def _const_spec(shape):
        # Grid-invariant block (constant index_map): request single buffering to
        # halve resident weight VMEM.  Fall back on JAX versions without
        # BlockSpec(pipeline_mode=...).
        idx = lambda i: (0,) * len(shape)
        if single_buffer_weights:
            try:
                return pl.BlockSpec(shape, idx, pipeline_mode=pl.Buffered(1))
            except (TypeError, AttributeError):
                pass
        return pl.BlockSpec(shape, idx)

    @jax.jit
    def forward(x):
        n, din = x.shape
        assert din == dims[0]

        # Row tiling: bf16-friendly multiples of 16 sublanes; keep >= 2 row tiles
        # when the batch allows so dimension_semantics=("parallel",) can shard
        # across both v7x TensorCores; cap tiles at 512 rows for large batches.
        n16 = _round_up(max(n, SUBLANE_BF16), SUBLANE_BF16)
        if n16 <= 2 * SUBLANE_BF16:
            tile_rows = n16
        elif n16 <= 1024:
            tile_rows = _round_up(pl.cdiv(n16, 2), SUBLANE_BF16)
        else:
            tile_rows = 512
        n_pad = _round_up(n16, tile_rows)

        # Only the activation is padded/cast per call (weights prepped once).
        # NOTE: padded batch rows produce nonzero garbage (relu(bias) propagates
        # through layers); they are sliced off below -- wasted FLOPs, not a bug.
        x_p = jnp.pad(x.astype(jnp.bfloat16),
                      ((0, n_pad - n), (0, dims_pad[0] - din)))

        args = [x_p]
        in_specs = [pl.BlockSpec((tile_rows, dims_pad[0]), lambda i: (i, 0))]
        for l in range(num_layers):
            args += [ws_p[l], bs_p[l]]
            in_specs += [_const_spec(ws_p[l].shape), _const_spec(bs_p[l].shape)]

        # Explicit VMEM budget: resident weights (x2 headroom in case the
        # single-buffer hint is unavailable) + double-buffered x/out tiles +
        # f32 accumulator / bf16 activation intermediates; clamp to [16, 64] MiB
        # so it is valid on v5e/v6e (128 MiB phys) and v7x (64 MiB phys).
        out_bytes = jnp.dtype(out_dtype).itemsize
        act_bytes = tile_rows * max(dims_pad) * (4 + 2)
        io_bytes = 2 * tile_rows * (dims_pad[0] * 2 + dims_pad[-1] * out_bytes)
        vmem_limit = int(min(64 << 20,
                             max(16 << 20,
                                 2 * weight_bytes + 2 * (act_bytes + io_bytes) + (2 << 20))))

        kernel = functools.partial(_mlp_fused_kernel, num_layers=num_layers)
        out = pl.pallas_call(
            kernel,
            out_shape=jax.ShapeDtypeStruct((n_pad, dims_pad[-1]), out_dtype),
            grid_spec=pltpu.PrefetchScalarGridSpec(
                num_scalar_prefetch=0,
                grid=(n_pad // tile_rows,),
                in_specs=in_specs,
                out_specs=pl.BlockSpec((tile_rows, dims_pad[-1]), lambda i: (i, 0)),
            ),
            compiler_params=pltpu.CompilerParams(
                dimension_semantics=("parallel",),      # megacore on v7x
                vmem_limit_bytes=vmem_limit,
            ),
        )(*args)
        return out[:n, :dims[-1]]

    return forward


# ----------------------------- reference / init ------------------------------ #
def mlp_reference(x, lins, bns, eps=1e-5):
    """Pure-JAX eval-mode forward matching the PyTorch module."""
    h = x
    for i in range(len(lins) - 1):
        w, b = lins[i]
        h = h @ w + b
        h = jnp.maximum(h, 0.0)                              # ReLU
        gamma, beta, mean, var = bns[i]
        h = (h - mean) * jax.lax.rsqrt(var + eps) * gamma + beta
        # dropout: identity in eval mode
    w, b = lins[-1]
    return h @ w + b


def init_mlp_params(key, in_dim, hidden, out_dim, num_layers):
    dims = [in_dim] + [hidden] * (num_layers - 1) + [out_dim]
    lins, bns = [], []
    for i in range(num_layers):
        key, kw, kb = jax.random.split(key, 3)
        bound = 1.0 / jnp.sqrt(jnp.float32(dims[i]))         # PyTorch Linear default
        w = jax.random.uniform(kw, (dims[i], dims[i + 1]), jnp.float32, -bound, bound)
        b = jax.random.uniform(kb, (dims[i + 1],), jnp.float32, -bound, bound)
        lins.append((w, b))
    for i in range(num_layers - 1):
        d = dims[i + 1]
        key, kg, kb2, km, kv = jax.random.split(key, 5)
        gamma = jax.random.uniform(kg, (d,), jnp.float32, 0.5, 1.5)
        beta = 0.1 * jax.random.normal(kb2, (d,), jnp.float32)
        mean = 0.1 * jax.random.normal(km, (d,), jnp.float32)
        var = jax.random.uniform(kv, (d,), jnp.float32, 0.5, 1.5)
        bns.append((gamma, beta, mean, var))
    return lins, bns


# --------------------------------- main -------------------------------------- #
if __name__ == "__main__":
    key = jax.random.PRNGKey(0)

    batch = 200                    # -> 224 padded rows, grid of 2 x 112-row tiles
    in_dim, hidden, out_dim, num_layers = 16, 32, 8, 3

    k_x, k_p = jax.random.split(key)
    x = jax.random.normal(k_x, (batch, in_dim), jnp.float32)
    lins, bns = init_mlp_params(k_p, in_dim, hidden, out_dim, num_layers)

    try:
        forward = make_mlp_forward(lins, bns)                       # single-buffered weights
        out = jax.block_until_ready(forward(x))
    except Exception:
        forward = make_mlp_forward(lins, bns, single_buffer_weights=False)
        out = jax.block_until_ready(forward(x))

    ref = mlp_reference(x, lins, bns)
    assert out.shape == (batch, out_dim)
    assert bool(jnp.all(jnp.isfinite(out)))
    max_err = float(jnp.max(jnp.abs(out - ref)))
    assert jnp.allclose(out, ref, atol=5e-2, rtol=5e-2), max_err

    # Tiny-batch path (single 16-row tile, grid of 1).
    x_small = x[:4]
    out_small = jax.block_until_ready(forward(x_small))
    ref_small = mlp_reference(x_small, lins, bns)
    assert jnp.allclose(out_small, ref_small, atol=5e-2, rtol=5e-2)

    print("KERNEL_OK")
</pallas_src>

<mosaic_0001>
module attributes {stable_mosaic.version = 11 : i64} {
  func.func @_mlp_fused_kernel(%arg0: i32, %arg1: memref<112x128xbf16, #tpu.memory_space<vmem>>, %arg2: memref<128x128xbf16, #tpu.memory_space<vmem>>, %arg3: memref<1x128xf32, #tpu.memory_space<vmem>>, %arg4: memref<128x128xbf16, #tpu.memory_space<vmem>>, %arg5: memref<1x128xf32, #tpu.memory_space<vmem>>, %arg6: memref<128x128xbf16, #tpu.memory_space<vmem>>, %arg7: memref<1x128xf32, #tpu.memory_space<vmem>>, %arg8: memref<112x128xf32, #tpu.memory_space<vmem>>) attributes {dimension_semantics = [#tpu.dimension_semantics<parallel>], iteration_bounds = array<i64: 2>, scalar_prefetch = 0 : i64, scratch_operands = 0 : i64, tpu.core_type = #tpu.core_type<tc>, window_params = [{transform_indices = @transform_0, window_bounds = array<i64: 112, 128>}, {pipeline_mode = #tpu.pipeline_mode<synchronous>, transform_indices = @transform_1, window_bounds = array<i64: 128, 128>}, {pipeline_mode = #tpu.pipeline_mode<synchronous>, transform_indices = @transform_2, window_bounds = array<i64: 1, 128>}, {pipeline_mode = #tpu.pipeline_mode<synchronous>, transform_indices = @transform_3, window_bounds = array<i64: 128, 128>}, {pipeline_mode = #tpu.pipeline_mode<synchronous>, transform_indices = @transform_4, window_bounds = array<i64: 1, 128>}, {pipeline_mode = #tpu.pipeline_mode<synchronous>, transform_indices = @transform_5, window_bounds = array<i64: 128, 128>}, {pipeline_mode = #tpu.pipeline_mode<synchronous>, transform_indices = @transform_6, window_bounds = array<i64: 1, 128>}, {transform_indices = @transform_7, window_bounds = array<i64: 112, 128>}]} {
    %c0 = arith.constant 0 : index
    %c0_0 = arith.constant 0 : index
    %0 = vector.load %arg1[%c0, %c0_0] : memref<112x128xbf16, #tpu.memory_space<vmem>>, vector<112x128xbf16>
    %c0_1 = arith.constant 0 : index
    %c0_2 = arith.constant 0 : index
    %1 = vector.load %arg2[%c0_1, %c0_2] : memref<128x128xbf16, #tpu.memory_space<vmem>>, vector<128x128xbf16>
    %cst = arith.constant dense<0.000000e+00> : vector<112x128xf32>
    %2 = tpu.matmul %0, %1, %cst {dimension_numbers = #tpu.dot_dimension_numbers<[1], [0], [0], [1], [0, 0, 1, 1], [], []>} : vector<112x128xbf16>, vector<128x128xbf16>, vector<112x128xf32> -> vector<112x128xf32>
    %c0_3 = arith.constant 0 : index
    %c0_4 = arith.constant 0 : index
    %3 = vector.load %arg3[%c0_3, %c0_4] : memref<1x128xf32, #tpu.memory_space<vmem>>, vector<1x128xf32>
    %4 = vector.broadcast %3 : vector<1x128xf32> to vector<112x128xf32>
    %5 = arith.addf %2, %4 : vector<112x128xf32>
    %cst_5 = arith.constant 0.000000e+00 : f32
    %6 = vector.broadcast %cst_5 : f32 to vector<112x128xf32>
    %7 = arith.maximumf %5, %6 : vector<112x128xf32>
    %8 = arith.truncf %7 : vector<112x128xf32> to vector<112x128xbf16>
    %c0_6 = arith.constant 0 : index
    %c0_7 = arith.constant 0 : index
    %9 = vector.load %arg4[%c0_6, %c0_7] : memref<128x128xbf16, #tpu.memory_space<vmem>>, vector<128x128xbf16>
    %cst_8 = arith.constant dense<0.000000e+00> : vector<112x128xf32>
    %10 = tpu.matmul %8, %9, %cst_8 {dimension_numbers = #tpu.dot_dimension_numbers<[1], [0], [0], [1], [0, 0, 1, 1], [], []>} : vector<112x128xbf16>, vector<128x128xbf16>, vector<112x128xf32> -> vector<112x128xf32>
    %c0_9 = arith.constant 0 : index
    %c0_10 = arith.constant 0 : index
    %11 = vector.load %arg5[%c0_9, %c0_10] : memref<1x128xf32, #tpu.memory_space<vmem>>, vector<1x128xf32>
    %12 = vector.broadcast %11 : vector<1x128xf32> to vector<112x128xf32>
    %13 = arith.addf %10, %12 : vector<112x128xf32>
    %cst_11 = arith.constant 0.000000e+00 : f32
    %14 = vector.broadcast %cst_11 : f32 to vector<112x128xf32>
    %15 = arith.maximumf %13, %14 : vector<112x128xf32>
    %16 = arith.truncf %15 : vector<112x128xf32> to vector<112x128xbf16>
    %c0_12 = arith.constant 0 : index
    %c0_13 = arith.constant 0 : index
    %17 = vector.load %arg6[%c0_12, %c0_13] : memref<128x128xbf16, #tpu.memory_space<vmem>>, vector<128x128xbf16>
    %cst_14 = arith.constant dense<0.000000e+00> : vector<112x128xf32>
    %18 = tpu.matmul %16, %17, %cst_14 {dimension_numbers = #tpu.dot_dimension_numbers<[1], [0], [0], [1], [0, 0, 1, 1], [], []>} : vector<112x128xbf16>, vector<128x128xbf16>, vector<112x128xf32> -> vector<112x128xf32>
    %c0_15 = arith.constant 0 : index
    %c0_16 = arith.constant 0 : index
    %19 = vector.load %arg7[%c0_15, %c0_16] : memref<1x128xf32, #tpu.memory_space<vmem>>, vector<1x128xf32>
    %20 = vector.broadcast %19 : vector<1x128xf32> to vector<112x128xf32>
    %21 = arith.addf %18, %20 : vector<112x128xf32>
    %c0_17 = arith.constant 0 : index
    %c0_18 = arith.constant 0 : index
    %22 = vector.load %arg8[%c0_17, %c0_18] : memref<112x128xf32, #tpu.memory_space<vmem>>, vector<112x128xf32>
    tpu.vector_store %arg8[%c0_17, %c0_18], %21 {strides = array<i32>} : memref<112x128xf32, #tpu.memory_space<vmem>>, vector<112x128xf32>,
    return
  }
  func.func @transform_0(%arg0: i32) -> (i32, i32) {
    %c0_i32 = arith.constant 0 : i32
    %c0_i32_0 = arith.constant 0 : i32
    return %arg0, %c0_i32 : i32, i32
  }
  func.func @transform_1(%arg0: i32) -> (i32, i32) {
    %c0_i32 = arith.constant 0 : i32
    %c0_i32_0 = arith.constant 0 : i32
    %c0_i32_1 = arith.constant 0 : i32
    return %c0_i32, %c0_i32_0 : i32, i32
  }
  func.func @transform_2(%arg0: i32) -> (i32, i32) {
    %c0_i32 = arith.constant 0 : i32
    %c0_i32_0 = arith.constant 0 : i32
    %c0_i32_1 = arith.constant 0 : i32
    return %c0_i32, %c0_i32_0 : i32, i32
  }
  func.func @transform_3(%arg0: i32) -> (i32, i32) {
    %c0_i32 = arith.constant 0 : i32
    %c0_i32_0 = arith.constant 0 : i32
    %c0_i32_1 = arith.constant 0 : i32
    return %c0_i32, %c0_i32_0 : i32, i32
  }
  func.func @transform_4(%arg0: i32) -> (i32, i32) {
    %c0_i32 = arith.constant 0 : i32
    %c0_i32_0 = arith.constant 0 : i32
    %c0_i32_1 = arith.constant 0 : i32
    return %c0_i32, %c0_i32_0 : i32, i32
  }
  func.func @transform_5(%arg0: i32) -> (i32, i32) {
    %c0_i32 = arith.constant 0 : i32
    %c0_i32_0 = arith.constant 0 : i32
    %c0_i32_1 = arith.constant 0 : i32
    return %c0_i32, %c0_i32_0 : i32, i32
  }
  func.func @transform_6(%arg0: i32) -> (i32, i32) {
    %c0_i32 = arith.constant 0 : i32
    %c0_i32_0 = arith.constant 0 : i32
    %c0_i32_1 = arith.constant 0 : i32
    return %c0_i32, %c0_i32_0 : i32, i32
  }
  func.func @transform_7(%arg0: i32) -> (i32, i32) {
    %c0_i32 = arith.constant 0 : i32
    %c0_i32_0 = arith.constant 0 : i32
    return %arg0, %c0_i32 : i32, i32
  }
}

module attributes {stable_mosaic.version = 11 : i64} {
  func.func @_mlp_fused_kernel(%arg0: i32, %arg1: memref<112x128xbf16, #tpu.memory_space<vmem>>, %arg2: memref<128x128xbf16, #tpu.memory_space<vmem>>, %arg3: memref<1x128xf32, #tpu.memory_space<vmem>>, %arg4: memref<128x128xbf16, #tpu.memory_space<vmem>>, %arg5: memref<1x128xf32, #tpu.memory_space<vmem>>, %arg6: memref<128x128xbf16, #tpu.memory_space<vmem>>, %arg7: memref<1x128xf32, #tpu.memory_space<vmem>>, %arg8: memref<112x128xf32, #tpu.memory_space<vmem>>) attributes {dimension_semantics = [#tpu.dimension_semantics<parallel>], iteration_bounds = array<i64: 2>, scalar_prefetch = 0 : i64, scratch_operands = 0 : i64, tpu.core_type = #tpu.core_type<tc>, window_params = [{transform_indices = @transform_0, window_bounds = array<i64: 112, 128>}, {pipeline_mode = #tpu.pipeline_mode<synchronous>, transform_indices = @transform_1, window_bounds = array<i64: 128, 128>}, {pipeline_mode = #tpu.pipeline_mode<synchronous>, transform_indices = @transform_2, window_bounds = array<i64: 1, 128>}, {pipeline_mode = #tpu.pipeline_mode<synchronous>, transform_indices = @transform_3, window_bounds = array<i64: 128, 128>}, {pipeline_mode = #tpu.pipeline_mode<synchronous>, transform_indices = @transform_4, window_bounds = array<i64: 1, 128>}, {pipeline_mode = #tpu.pipeline_mode<synchronous>, transform_indices = @transform_5, window_bounds = array<i64: 128, 128>}, {pipeline_mode = #tpu.pipeline_mode<synchronous>, transform_indices = @transform_6, window_bounds = array<i64: 1, 128>}, {transform_indices = @transform_7, window_bounds = array<i64: 112, 128>}]} {
    %c0 = arith.constant 0 : index
    %c0_0 = arith.constant 0 : index
    %0 = vector.load %arg1[%c0, %c0_0] : memref<112x128xbf16, #tpu.memory_space<vmem>>, vector<112x128xbf16>
    %c0_1 = arith.constant 0 : index
    %c0_2 = arith.constant 0 : index
    %1 = vector.load %arg2[%c0_1, %c0_2] : memref<128x128xbf16, #tpu.memory_space<vmem>>, vector<128x128xbf16>
    %cst = arith.constant dense<0.000000e+00> : vector<112x128xf32>
    %2 = tpu.matmul %0, %1, %cst {dimension_numbers = #tpu.dot_dimension_numbers<[1], [0], [0], [1], [0, 0, 1, 1], [], []>} : vector<112x128xbf16>, vector<128x128xbf16>, vector<112x128xf32> -> vector<112x128xf32>
    %c0_3 = arith.constant 0 : index
    %c0_4 = arith.constant 0 : index
    %3 = vector.load %arg3[%c0_3, %c0_4] : memref<1x128xf32, #tpu.memory_space<vmem>>, vector<1x128xf32>
    %4 = vector.broadcast %3 : vector<1x128xf32> to vector<112x128xf32>
    %5 = arith.addf %2, %4 : vector<112x128xf32>
    %cst_5 = arith.constant 0.000000e+00 : f32
    %6 = vector.broadcast %cst_5 : f32 to vector<112x128xf32>
    %7 = arith.maximumf %5, %6 : vector<112x128xf32>
    %8 = arith.truncf %7 : vector<112x128xf32> to vector<112x128xbf16>
    %c0_6 = arith.constant 0 : index
    %c0_7 = arith.constant 0 : index
    %9 = vector.load %arg4[%c0_6, %c0_7] : memref<128x128xbf16, #tpu.memory_space<vmem>>, vector<128x128xbf16>
    %cst_8 = arith.constant dense<0.000000e+00> : vector<112x128xf32>
    %10 = tpu.matmul %8, %9, %cst_8 {dimension_numbers = #tpu.dot_dimension_numbers<[1], [0], [0], [1], [0, 0, 1, 1], [], []>} : vector<112x128xbf16>, vector<128x128xbf16>, vector<112x128xf32> -> vector<112x128xf32>
    %c0_9 = arith.constant 0 : index
    %c0_10 = arith.constant 0 : index
    %11 = vector.load %arg5[%c0_9, %c0_10] : memref<1x128xf32, #tpu.memory_space<vmem>>, vector<1x128xf32>
    %12 = vector.broadcast %11 : vector<1x128xf32> to vector<112x128xf32>
    %13 = arith.addf %10, %12 : vector<112x128xf32>
    %cst_11 = arith.constant 0.000000e+00 : f32
    %14 = vector.broadcast %cst_11 : f32 to vector<112x128xf32>
    %15 = arith.maximumf %13, %14 : vector<112x128xf32>
    %16 = arith.truncf %15 : vector<112x128xf32> to vector<112x128xbf16>
    %c0_12 = arith.constant 0 : index
    %c0_13 = arith.constant 0 : index
    %17 = vector.load %arg6[%c0_12, %c0_13] : memref<128x128xbf16, #tpu.memory_space<vmem>>, vector<128x128xbf16>
    %cst_14 = arith.constant dense<0.000000e+00> : vector<112x128xf32>
    %18 = tpu.matmul %16, %17, %cst_14 {dimension_numbers = #tpu.dot_dimension_numbers<[1], [0], [0], [1], [0, 0, 1, 1], [], []>} : vector<112x128xbf16>, vector<128x128xbf16>, vector<112x128xf32> -> vector<112x128xf32>
    %c0_15 = arith.constant 0 : index
    %c0_16 = arith.constant 0 : index
    %19 = vector.load %arg7[%c0_15, %c0_16] : memref<1x128xf32, #tpu.memory_space<vmem>>, vector<1x128xf32>
    %20 = vector.broadcast %19 : vector<1x128xf32> to vector<112x128xf32>
    %21 = arith.addf %18, %20 : vector<112x128xf32>
    %c0_17 = arith.constant 0 : index
    %c0_18 = arith.constant 0 : index
    %22 = vector.load %arg8[%c0_17, %c0_18] : memref<112x128xf32, #tpu.memory_space<vmem>>, vector<112x128xf32>
    tpu.vector_store %arg8[%c0_17, %c0_18], %21 {strides = array<i32>} : memref<112x128xf32, #tpu.memory_space<vmem>>, vector<112x128xf32>,
    return
  }
  func.func @transform_0(%arg0: i32) -> (i32, i32) {
    %c0_i32 = arith.constant 0 : i32
    %c0_i32_0 = arith.constant 0 : i32
    return %arg0, %c0_i32 : i32, i32
  }
  func.func @transform_1(%arg0: i32) -> (i32, i32) {
    %c0_i32 = arith.constant 0 : i32
    %c0_i32_0 = arith.constant 0 : i32
    %c0_i32_1 = arith.constant 0 : i32
    return %c0_i32, %c0_i32_0 : i32, i32
  }
  func.func @transform_2(%arg0: i32) -> (i32, i32) {
    %c0_i32 = arith.constant 0 : i32
    %c0_i32_0 = arith.constant 0 : i32
    %c0_i32_1 = arith.constant 0 : i32
    return %c0_i32, %c0_i32_0 : i32, i32
  }
  func.func @transform_3(%arg0: i32) -> (i32, i32) {
    %c0_i32 = arith.constant 0 : i32
    %c0_i32_0 = arith.constant 0 : i32
    %c0_i32_1 = arith.constant 0 : i32
    return %c0_i32, %c0_i32_0 : i32, i32
  }
  func.func @transform_4(%arg0: i32) -> (i32, i32) {
    %c0_i32 = arith.constant 0 : i32
    %c0_i32_0 = arith.constant 0 : i32
    %c0_i32_1 = arith.constant 0 : i32
    return %c0_i32, %c0_i32_0 : i32, i32
  }
  func.func @transform_5(%arg0: i32) -> (i32, i32) {
    %c0_i32 = arith.constant 0 : i32
    %c0_i32_0 = arith.constant 0 : i32
    %c0_i32_1 = arith.constant 0 : i32
    return %c0_i32, %c0_i32_0 : i32, i32
  }
  func.func @transform_6(%arg0: i32) -> (i32, i32) {
    %c0_i32 = arith.constant 0 : i32
    %c0_i32_0 = arith.constant 0 : i32
    %c0_i32_1 = arith.constant 0 : i32
    return %c0_i32, %c0_i32_0 : i32, i32
  }
  func.func @transform_7(%arg0: i32) -> (i32, i32) {
    %c0_i32 = arith.constant 0 : i32
    %c0_i32_0 = arith.constant 0 : i32
    return %arg0, %c0_i32 : i32, i32
  }
}

</mosaic_0001>

<bundles_post_ra>
// kernel: forward.1
= control target key start
LH: loop header
LB: loop body
LE: loop exit
PB: predicated region body
PF: predicated region fallthrough
CT: control target
= control target key end

     0   :  { %s1258_s24 = smov 0   ;;  %s1491_s0 = inlined_call_operand.vmem [shape: bf16[224,128], index: 0, kind: input, shape index: {}]   ;;  %s1492_s1 = inlined_call_operand.vmem [shape: bf16[128,128], index: 1, kind: input, shape index: {}]   ;;  %s1493_s2 = inlined_call_operand.vmem [shape: f32[1,128], index: 2, kind: input, shape index: {}]   ;;  %s1494_s3 = inlined_call_operand.vmem [shape: bf16[128,128], index: 3, kind: input, shape index: {}]   ;;  %s1495_s4 = inlined_call_operand.vmem [shape: f32[1,128], index: 4, kind: input, shape index: {}]   ;;  %s1496_s5 = inlined_call_operand.vmem [shape: bf16[128,128], index: 5, kind: input, shape index: {}]   ;;  %s1497_s6 = inlined_call_operand.vmem [shape: f32[1,128], index: 6, kind: input, shape index: {}]   ;;  %s1498_s7 = inlined_call_operand.vmem [shape: f32[224,128], index: 7, kind: output, shape index: {}]  }
   0x1 LB: > { %s931_s25 = sadd.s32 4294967295, %s1214_s24   ;;  %p935_p0 = scmp.ge.s32.totalorder %s1214_s24, 1  ;;  %s1214_s24 = sphi %s1258_s24, %s17_s24  }
   0x2   : > { %p238_p1 = scmp.lt.s32.totalorder %s1214_s24, 3 }
   0x4   : > { %p239_p2 = pnand %p935_p0, %p238_p1 }
   0x5   : > { %s270_s30 = smul.u32 (!%p239_p2), 14, %s931_s25 }
   0x6   : > { %242 = sbr.rel (%p239_p2) target bundleno = 698 (0x2ba), region = 48 }
   0x7   : > { %p271_p3 = scmp.lt.s32.totalorder (!%p239_p2), %s270_s30, 27 }
   0xb   : > { %v1177_v0 = vld [vmem:[%s1492_s1 + $0x38] sm:$0xff]   ;;  %v1216_v1 = vmov 0.0   ;;  %v1178_v2 = vld [vmem:[%s1492_s1 + $0x30] sm:$0xff]   ;;  %vm1217_vm0 = vmmov 0   ;;  %v1179_v3 = vld [vmem:[%s1492_s1 + $0x28] sm:$0xff]   ;;  %s1500_s30 = smov (!%p271_p3, %s270_s30), 27 }
   0xc   : > { %1019 = vmatprep.subr.bf16.mxu0 %v1216_v1  ;;  %1151 = vmatprep.subr.bf16.mxu1 %v1216_v1  ;;  %s936_s10 = sshll.u32 %s1500_s30, 2  ;;  %v1180_v4 = vld [vmem:[%s1492_s1 + $0x20] sm:$0xff]   ;;  %v1181_v5 = vld [vmem:[%s1492_s1 + $0x18] sm:$0xff]   ;;  %v1182_v6 = vld [vmem:[%s1492_s1 + $0x10] sm:$0xff]  }
   0xd   : > { %1020 = vmatpush3.bf16.msra.mxu0 %v1177_v0  ;;  %1159 = vmatpush3.bf16.msra.mxu1 %v1177_v0  ;;  %s1291_s13 = scalar_lea.vmem %s1491_s0, %s936_s10  ;;  %v1183_v7 = vld [vmem:[%s1492_s1 + $0x8] sm:$0xff]   ;;  %v1184_v8 = vld [vmem:[%s1492_s1] sm:$0xff]   ;;  %v1192_v11 = vld [vmem:[%s1494_s3 + $0x38] sm:$0xff]  }
   0xe   : > { %1021 = vmatprep.subr.bf16.mxu0 %v1216_v1  ;;  %1152 = vmatprep.subr.bf16.mxu1 %v1216_v1  ;;  %v1185_v9 = vld [vmem:[%s1291_s13] sm:$0xff]   ;;  %v1193_v12 = vld [vmem:[%s1494_s3 + $0x30] sm:$0xff]   ;;  %v1186_v13 = vld [vmem:[%s1291_s13 + $0x8] sm:$0xff]  }
   0xf   : > { %1035 = vmatprep.mubr.msk.bf16.mxu0 %vm1217_vm0, %v1216_v1  ;;  %1051 = vmatprep.mubr.msk.bf16.mxu1 %vm1217_vm0, %v1216_v1  ;;  %v1189_v10 = vld [vmem:[%s1291_s13 + $0x20] sm:$0xff]   ;;  %v1190_v14 = vld [vmem:[%s1291_s13 + $0x28] sm:$0xff]   ;;  %v1187_v17 = vld [vmem:[%s1291_s13 + $0x10] sm:$0xff]  }
  0x10   : > { %v1194_v15 = vld [vmem:[%s1494_s3 + $0x28] sm:$0xff]   ;;  %v1195_v16 = vld [vmem:[%s1494_s3 + $0x20] sm:$0xff]   ;;  %v1191_v18 = vld [vmem:[%s1291_s13 + $0x30] sm:$0xff]  }
  0x11   : > { %1022 = vmatpush3.bf16.msra.mxu0 %v1178_v2  ;;  %1160 = vmatpush3.bf16.msra.mxu1 %v1178_v2  ;;  %v1196_v19 = vld [vmem:[%s1494_s3 + $0x18] sm:$0xff]   ;;  %v1197_v21 = vld [vmem:[%s1494_s3 + $0x10] sm:$0xff]   ;;  %v1198_v22 = vld [vmem:[%s1494_s3 + $0x8] sm:$0xff]  }
  0x12   : > { %1023 = vmatprep.subr.bf16.mxu0 %v1216_v1  ;;  %1153 = vmatprep.subr.bf16.mxu1 %v1216_v1  ;;  %v1188_v20 = vld [vmem:[%s1291_s13 + $0x18] sm:$0xff]   ;;  %v1199_v23 = vld [vmem:[%s1494_s3] sm:$0xff]   ;;  %v1201_v25 = vld [vmem:[%s1496_s5 + $0x30] sm:$0xff]   ;;  %s937_s13 = sshll.u32 %s1500_s30, 3 }
  0x13   : > { %v1200_v24 = vld [vmem:[%s1496_s5 + $0x38] sm:$0xff]   ;;  %v1202_v26 = vld [vmem:[%s1496_s5 + $0x28] sm:$0xff]   ;;  %v1203_v27 = vld [vmem:[%s1496_s5 + $0x20] sm:$0xff]   ;;  %s1472_s23 = scalar_lea.vmem %s1498_s7, %s937_s13 }
  0x14   : > { %v1204_v28 = vld [vmem:[%s1496_s5 + $0x18] sm:$0xff]   ;;  %v1205_v29 = vld [vmem:[%s1496_s5 + $0x10] sm:$0xff]   ;;  %v1399_v30 = vld [vmem:[%s1493_s2] ss:$0 sm:$0xff] }
  0x15   : > { %1024 = vmatpush3.bf16.msra.mxu0 %v1179_v3  ;;  %1161 = vmatpush3.bf16.msra.mxu1 %v1179_v3 }
  0x16   : > { %1025 = vmatprep.subr.bf16.mxu0 %v1216_v1  ;;  %1154 = vmatprep.subr.bf16.mxu1 %v1216_v1 }
  0x19   : > { %1026 = vmatpush3.bf16.msra.mxu0 %v1180_v4  ;;  %1162 = vmatpush3.bf16.msra.mxu1 %v1180_v4 }
  0x1a   : > { %1027 = vmatprep.subr.bf16.mxu0 %v1216_v1  ;;  %1155 = vmatprep.subr.bf16.mxu1 %v1216_v1 }
  0x1d   : > { %1028 = vmatpush3.bf16.msra.mxu0 %v1181_v5  ;;  %1163 = vmatpush3.bf16.msra.mxu1 %v1181_v5 }
  0x1e   : > { %1029 = vmatprep.subr.bf16.mxu0 %v1216_v1  ;;  %1156 = vmatprep.subr.bf16.mxu1 %v1216_v1 }
  0x21   : > { %1030 = vmatpush3.bf16.msra.mxu0 %v1182_v6  ;;  %1164 = vmatpush3.bf16.msra.mxu1 %v1182_v6 }
  0x22   : > { %1031 = vmatprep.subr.bf16.mxu0 %v1216_v1  ;;  %1157 = vmatprep.subr.bf16.mxu1 %v1216_v1 }
  0x25   : > { %1032 = vmatpush3.bf16.msra.mxu0 %v1183_v7  ;;  %1165 = vmatpush3.bf16.msra.mxu1 %v1183_v7 }
  0x26   : > { %1033 = vmatprep.subr.bf16.mxu0 %v1216_v1  ;;  %1158 = vmatprep.subr.bf16.mxu1 %v1216_v1 }
  0x29   : > { %1034 = vmatpush3.bf16.msra.mxu0 %v1184_v8  ;;  %1166 = vmatpush3.bf16.msra.mxu1 %v1184_v8 }
  0x2a   : > { %1063 = vmatprep.subr.bf16.mxu1 %v1216_v1  ;;  %1107 = vmatprep.subr.bf16.mxu0 %v1216_v1 }
  0x2c   : > { %1036 = vmatmul.mubr.bf16.vlgmr.msra.gmra.mxu0 %v1185_v9  ;;  %1052 = vmatmul.mubr.bf16.vlgmr.msra.gmra.mxu1 %v1189_v10 }
  0x2d   : > { %1039 = vmatprep.mubr.msk.bf16.mxu0 %vm1217_vm0, %v1216_v1  ;;  %1055 = vmatprep.mubr.msk.bf16.mxu1 %vm1217_vm0, %v1216_v1 }
  0x2e   : > { %1064 = vmatpush3.bf16.msra.mxu1 %v1192_v11  ;;  %1108 = vmatpush3.bf16.msra.mxu0 %v1200_v24 }
  0x2f   : > { %1065 = vmatprep.subr.bf16.mxu1 %v1216_v1  ;;  %1109 = vmatprep.subr.bf16.mxu0 %v1216_v1 }
  0x32   : > { %1066 = vmatpush3.bf16.msra.mxu1 %v1193_v12  ;;  %1110 = vmatpush3.bf16.msra.mxu0 %v1201_v25 }
  0x33   : > { %1067 = vmatprep.subr.bf16.mxu1 %v1216_v1  ;;  %1111 = vmatprep.subr.bf16.mxu0 %v1216_v1 }
  0x34   : > { %1040 = vmatmul.mubr.bf16.gmra.mxu0 %v1186_v13  ;;  %1056 = vmatmul.mubr.bf16.gmra.mxu1 %v1190_v14 }
  0x35   : > { %1043 = vmatprep.mubr.msk.bf16.mxu0 %vm1217_vm0, %v1216_v1  ;;  %1059 = vmatprep.mubr.msk.bf16.mxu1 %vm1217_vm0, %v1216_v1 }
  0x36   : > { %1068 = vmatpush3.bf16.msra.mxu1 %v1194_v15  ;;  %1112 = vmatpush3.bf16.msra.mxu0 %v1202_v26 }
  0x37   : > { %1069 = vmatprep.subr.bf16.mxu1 %v1216_v1  ;;  %1113 = vmatprep.subr.bf16.mxu0 %v1216_v1 }
  0x3a   : > { %1070 = vmatpush3.bf16.msra.mxu1 %v1195_v16  ;;  %1114 = vmatpush3.bf16.msra.mxu0 %v1203_v27 }
  0x3b   : > { %1071 = vmatprep.subr.bf16.mxu1 %v1216_v1  ;;  %1115 = vmatprep.subr.bf16.mxu0 %v1216_v1 }
  0x3c   : > { %1044 = vmatmul.mubr.bf16.gmra.mxu0 %v1187_v17  ;;  %1060 = vmatmul.mubr.bf16.gmra.mxu1 %v1191_v18 }
  0x3d   : > { %1047 = vmatprep.mubr.msk.bf16.mxu0 %vm1217_vm0, %v1216_v1  ;;  %1079 = vmatprep.mubr.msk.bf16.mxu1 %vm1217_vm0, %v1216_v1 }
  0x3e   : > { %1072 = vmatpush3.bf16.msra.mxu1 %v1196_v19  ;;  %1116 = vmatpush3.bf16.msra.mxu0 %v1204_v28 }
  0x3f   : > { %1073 = vmatprep.subr.bf16.mxu1 %v1216_v1  ;;  %1117 = vmatprep.subr.bf16.mxu0 %v1216_v1 }
  0x42   : > { %1074 = vmatpush3.bf16.msra.mxu1 %v1197_v21  ;;  %1118 = vmatpush3.bf16.msra.mxu0 %v1205_v29 }
  0x43   : > { %1075 = vmatprep.subr.bf16.mxu1 %v1216_v1  ;;  %1119 = vmatprep.subr.bf16.mxu0 %v1216_v1 }
  0x44   : > { %1048 = vmatmul.mubr.bf16.gmra.mxu0 %v1188_v20 }
  0x45   : > { %1123 = vmatprep.mubr.msk.bf16.mxu0 %vm1217_vm0, %v1216_v1 }
  0x46   : > { %1076 = vmatpush3.bf16.msra.mxu1 %v1198_v22 }
  0x47   : > { %1077 = vmatprep.subr.bf16.mxu1 %v1216_v1 }
  0x4a   : > { %1078 = vmatpush3.bf16.msra.mxu1 %v1199_v23 }
  0xec   : > { %v444_v31 = vpop.f32.mrf.mxu0  ;;  %v476_v32 = vpop.f32.mrf.mxu1 }
  0xed   : > { %v445_v35 = vadd.f32 %v1399_v30, %v444_v31  ;;  %v477_v15 = vadd.f32 %v1399_v30, %v476_v32  ;;  %v1206_v32 = vld [vmem:[%s1496_s5 + $0x8] sm:$0xff]  }
  0xee   : > { %v1037_v33 = vpop.f32.mrf.mxu0  ;;  %v1053_v34 = vpop.f32.mrf.mxu1  ;;  %1120 = vmatpush3.bf16.msra.mxu0 %v1206_v32 }
  0xef   : > { %v499_v41 = vmax.f32 %v445_v35, 0.0  ;;  %v507_v18 = vmax.f32 %v477_v15, 0.0  ;;  %1121 = vmatprep.subr.bf16.mxu0 %v1216_v1  ;;  %v1207_v33 = vld [vmem:[%s1496_s5] sm:$0xff]  }
  0xf0   : > { %v447_v36 = vpop.f32.mrf.mxu0  ;;  %v479_v37 = vpop.f32.mrf.mxu1 }
  0xf1   : > { %v448_v38 = vadd.f32 %v1399_v30, %v447_v36  ;;  %v480_v17 = vadd.f32 %v1399_v30, %v479_v37 }
  0xf2   : > { %v1038_v39 = vpop.f32.mrf.mxu0  ;;  %v1054_v40 = vpop.f32.mrf.mxu1  ;;  %1122 = vmatpush3.bf16.msra.mxu0 %v1207_v33 }
  0xf3   : > { %v500_v42 = vmax.f32 %v448_v38, 0.0  ;;  %v508_v19 = vmax.f32 %v480_v17, 0.0 }
  0xf4   : > { %v452_v43 = vpop.f32.mrf.mxu0  ;;  %v484_v44 = vpop.f32.mrf.mxu1 }
  0xf5   : > { %v513_v45 = vpack.c.bf16 %v500_v42, %v499_v41  ;;  %v453_v48 = vadd.f32 %v1399_v30, %v452_v43  ;;  %v517_v20 = vpack.c.bf16 %v508_v19, %v507_v18  ;;  %v485_v21 = vadd.f32 %v1399_v30, %v484_v44 }
  0xf6   : > { %v1041_v46 = vpop.f32.mrf.mxu0  ;;  %v1057_v47 = vpop.f32.mrf.mxu1 }
  0xf7   : > { %1080 = vmatmul.mubr.bf16.vlgmr.msra.gmra.mxu1 %v513_v45  ;;  %v501_v54 = vmax.f32 %v453_v48, 0.0  ;;  %v509_v23 = vmax.f32 %v485_v21, 0.0 }
  0xf8   : > { %v455_v49 = vpop.f32.mrf.mxu0  ;;  %1083 = vmatprep.mubr.msk.bf16.mxu1 %vm1217_vm0, %v1216_v1  ;;  %v487_v50 = vpop.f32.mrf.mxu1 }
  0xf9   : > { %v456_v51 = vadd.f32 %v1399_v30, %v455_v49  ;;  %v488_v22 = vadd.f32 %v1399_v30, %v487_v50 }
  0xfa   : > { %v1042_v52 = vpop.f32.mrf.mxu0  ;;  %v1058_v53 = vpop.f32.mrf.mxu1 }
  0xfb   : > { %v502_v55 = vmax.f32 %v456_v51, 0.0  ;;  %v510_v24 = vmax.f32 %v488_v22, 0.0 }
  0xfc   : > { %v460_v56 = vpop.f32.mrf.mxu0  ;;  %v492_v57 = vpop.f32.mrf.mxu1 }
  0xfd   : > { %v514_v58 = vpack.c.bf16 %v502_v55, %v501_v54  ;;  %v461_v61 = vadd.f32 %v1399_v30, %v460_v56  ;;  %v518_v25 = vpack.c.bf16 %v510_v24, %v509_v23  ;;  %v493_v26 = vadd.f32 %v1399_v30, %v492_v57 }
  0xfe   : > { %v1045_v59 = vpop.f32.mrf.mxu0  ;;  %v1061_v60 = vpop.f32.mrf.mxu1 }
  0xff   : > { %1084 = vmatmul.mubr.bf16.gmra.mxu1 %v514_v58  ;;  %v503_v4 = vmax.f32 %v461_v61, 0.0  ;;  %v511_v28 = vmax.f32 %v493_v26, 0.0 }
 0x100   : > { %v463_v62 = vpop.f32.mrf.mxu0  ;;  %1087 = vmatprep.mubr.msk.bf16.mxu1 %vm1217_vm0, %v1216_v1  ;;  %v495_v63 = vpop.f32.mrf.mxu1 }
 0x101   : > { %v464_v0 = vadd.f32 %v1399_v30, %v463_v62  ;;  %v496_v27 = vadd.f32 %v1399_v30, %v495_v63 }
 0x102   : > { %v1046_v2 = vpop.f32.mrf.mxu0  ;;  %v1062_v3 = vpop.f32.mrf.mxu1 }
 0x103   : > { %v504_v5 = vmax.f32 %v464_v0, 0.0  ;;  %v512_v29 = vmax.f32 %v496_v27, 0.0 }
 0x104   : > { %v468_v6 = vpop.f32.mrf.mxu0 }
 0x105   : > { %v515_v7 = vpack.c.bf16 %v504_v5, %v503_v4  ;;  %v469_v9 = vadd.f32 %v1399_v30, %v468_v6  ;;  %v519_v31 = vpack.c.bf16 %v512_v29, %v511_v28 }
 0x106   : > { %v1049_v8 = vpop.f32.mrf.mxu0 }
 0x107   : > { %1088 = vmatmul.mubr.bf16.gmra.mxu1 %v515_v7  ;;  %v505_v13 = vmax.f32 %v469_v9, 0.0 }
 0x108   : > { %v471_v10 = vpop.f32.mrf.mxu0  ;;  %1091 = vmatprep.mubr.msk.bf16.mxu1 %vm1217_vm0, %v1216_v1 }
 0x109   : > { %v472_v11 = vadd.f32 %v1399_v30, %v471_v10  ;;  %v1437_v30 = vld [vmem:[%s1495_s4] ss:$0 sm:$0xff] }
 0x10a   : > { %v1050_v12 = vpop.f32.mrf.mxu0 }
 0x10b   : > { %v506_v14 = vmax.f32 %v472_v11, 0.0 }
 0x10d   : > { %v516_v16 = vpack.c.bf16 %v506_v14, %v505_v13 }
 0x10f   : > { %1092 = vmatmul.mubr.bf16.gmra.mxu1 %v516_v16 }
 0x110   : > { %1095 = vmatprep.mubr.msk.bf16.mxu1 %vm1217_vm0, %v1216_v1 }
 0x117   : > { %1096 = vmatmul.mubr.bf16.gmra.mxu1 %v517_v20 }
 0x118   : > { %1099 = vmatprep.mubr.msk.bf16.mxu1 %vm1217_vm0, %v1216_v1 }
 0x11f   : > { %1100 = vmatmul.mubr.bf16.gmra.mxu1 %v518_v25 }
 0x120   : > { %1103 = vmatprep.mubr.msk.bf16.mxu1 %vm1217_vm0, %v1216_v1 }
 0x127   : > { %1104 = vmatmul.mubr.bf16.gmra.mxu1 %v519_v31 }
 0x1b7   : > { %v625_v34 = vpop.f32.mrf.mxu1 }
 0x1b8   : > { %v626_v36 = vadd.f32 %v1437_v30, %v625_v34 }
 0x1b9   : > { %v1081_v35 = vpop.f32.mrf.mxu1 }
 0x1ba   : > { %v680_v40 = vmax.f32 %v626_v36, 0.0  ;;  %v963_v35 = vld [vmem:[%s1497_s6] ss:$0 sm:$0xff] }
 0x1bb   : > { %v628_v37 = vpop.f32.mrf.mxu1 }
 0x1bc   : > { %v629_v38 = vadd.f32 %v1437_v30, %v628_v37 }
 0x1bd   : > { %v1082_v39 = vpop.f32.mrf.mxu1 }
 0x1be   : > { %v681_v41 = vmax.f32 %v629_v38, 0.0 }
 0x1bf   : > { %v633_v42 = vpop.f32.mrf.mxu1 }
 0x1c0   : > { %v694_v43 = vpack.c.bf16 %v681_v41, %v680_v40  ;;  %v634_v45 = vadd.f32 %v1437_v30, %v633_v42 }
 0x1c1   : > { %v1085_v44 = vpop.f32.mrf.mxu1 }
 0x1c2   : > { %1124 = vmatmul.mubr.bf16.vlgmr.msra.gmra.mxu0 %v694_v43  ;;  %v682_v49 = vmax.f32 %v634_v45, 0.0 }
 0x1c3   : > { %v636_v46 = vpop.f32.mrf.mxu1  ;;  %1127 = vmatprep.mubr.msk.bf16.mxu0 %vm1217_vm0, %v1216_v1 }
 0x1c4   : > { %v637_v47 = vadd.f32 %v1437_v30, %v636_v46 }
 0x1c5   : > { %v1086_v48 = vpop.f32.mrf.mxu1 }
 0x1c6   : > { %v683_v50 = vmax.f32 %v637_v47, 0.0 }
 0x1c7   : > { %v641_v51 = vpop.f32.mrf.mxu1 }
 0x1c8   : > { %v695_v52 = vpack.c.bf16 %v683_v50, %v682_v49  ;;  %v642_v54 = vadd.f32 %v1437_v30, %v641_v51 }
 0x1c9   : > { %v1089_v53 = vpop.f32.mrf.mxu1 }
 0x1ca   : > { %1128 = vmatmul.mubr.bf16.gmra.mxu0 %v695_v52  ;;  %v684_v58 = vmax.f32 %v642_v54, 0.0 }
 0x1cb   : > { %v644_v55 = vpop.f32.mrf.mxu1  ;;  %1131 = vmatprep.mubr.msk.bf16.mxu0 %vm1217_vm0, %v1216_v1 }
 0x1cc   : > { %v645_v56 = vadd.f32 %v1437_v30, %v644_v55 }
 0x1cd   : > { %v1090_v57 = vpop.f32.mrf.mxu1 }
 0x1ce   : > { %v685_v59 = vmax.f32 %v645_v56, 0.0 }
 0x1cf   : > { %v649_v60 = vpop.f32.mrf.mxu1 }
 0x1d0   : > { %v696_v61 = vpack.c.bf16 %v685_v59, %v684_v58  ;;  %v650_v63 = vadd.f32 %v1437_v30, %v649_v60 }
 0x1d1   : > { %v1093_v62 = vpop.f32.mrf.mxu1 }
 0x1d2   : > { %1132 = vmatmul.mubr.bf16.gmra.mxu0 %v696_v61  ;;  %v686_v4 = vmax.f32 %v650_v63, 0.0 }
 0x1d3   : > { %v652_v0 = vpop.f32.mrf.mxu1  ;;  %1135 = vmatprep.mubr.msk.bf16.mxu0 %vm1217_vm0, %v1216_v1 }
 0x1d4   : > { %v653_v2 = vadd.f32 %v1437_v30, %v652_v0 }
 0x1d5   : > { %v1094_v3 = vpop.f32.mrf.mxu1 }
 0x1d6   : > { %v687_v5 = vmax.f32 %v653_v2, 0.0 }
 0x1d7   : > { %v657_v6 = vpop.f32.mrf.mxu1 }
 0x1d8   : > { %v697_v7 = vpack.c.bf16 %v687_v5, %v686_v4  ;;  %v658_v9 = vadd.f32 %v1437_v30, %v657_v6 }
 0x1d9   : > { %v1097_v8 = vpop.f32.mrf.mxu1 }
 0x1da   : > { %1136 = vmatmul.mubr.bf16.gmra.mxu0 %v697_v7  ;;  %v688_v13 = vmax.f32 %v658_v9, 0.0 }
 0x1db   : > { %v660_v10 = vpop.f32.mrf.mxu1  ;;  %1139 = vmatprep.mubr.msk.bf16.mxu0 %vm1217_vm0, %v1216_v1 }
 0x1dc   : > { %v661_v11 = vadd.f32 %v1437_v30, %v660_v10 }
 0x1dd   : > { %v1098_v12 = vpop.f32.mrf.mxu1 }
 0x1de   : > { %v689_v14 = vmax.f32 %v661_v11, 0.0 }
 0x1df   : > { %v665_v15 = vpop.f32.mrf.mxu1 }
 0x1e0   : > { %v698_v16 = vpack.c.bf16 %v689_v14, %v688_v13  ;;  %v666_v18 = vadd.f32 %v1437_v30, %v665_v15 }
 0x1e1   : > { %v1101_v17 = vpop.f32.mrf.mxu1 }
 0x1e2   : > { %1140 = vmatmul.mubr.bf16.gmra.mxu0 %v698_v16  ;;  %v690_v22 = vmax.f32 %v666_v18, 0.0 }
 0x1e3   : > { %v668_v19 = vpop.f32.mrf.mxu1  ;;  %1143 = vmatprep.mubr.msk.bf16.mxu0 %vm1217_vm0, %v1216_v1 }
 0x1e4   : > { %v669_v20 = vadd.f32 %v1437_v30, %v668_v19 }
 0x1e5   : > { %v1102_v21 = vpop.f32.mrf.mxu1 }
 0x1e6   : > { %v691_v23 = vmax.f32 %v669_v20, 0.0 }
 0x1e7   : > { %v673_v24 = vpop.f32.mrf.mxu1 }
 0x1e8   : > { %v699_v25 = vpack.c.bf16 %v691_v23, %v690_v22  ;;  %v674_v27 = vadd.f32 %v1437_v30, %v673_v24 }
 0x1e9   : > { %v1105_v26 = vpop.f32.mrf.mxu1 }
 0x1ea   : > { %1144 = vmatmul.mubr.bf16.gmra.mxu0 %v699_v25  ;;  %v692_v32 = vmax.f32 %v674_v27, 0.0 }
 0x1eb   : > { %v676_v28 = vpop.f32.mrf.mxu1  ;;  %1147 = vmatprep.mubr.msk.bf16.mxu0 %vm1217_vm0, %v1216_v1 }
 0x1ec   : > { %v677_v29 = vadd.f32 %v1437_v30, %v676_v28 }
 0x1ed   : > { %v1106_v31 = vpop.f32.mrf.mxu1 }
 0x1ee   : > { %v693_v33 = vmax.f32 %v677_v29, 0.0 }
 0x1f0   : > { %v700_v34 = vpack.c.bf16 %v693_v33, %v692_v32 }
 0x1f2   : > { %1148 = vmatmul.mubr.bf16.gmra.mxu0 %v700_v34 }
 0x282   : > { %v806_v1 = vpop.f32.mrf.mxu0 }
 0x283   : > { %v807_v30 = vadd.f32 %v963_v35, %v806_v1 }
 0x284   : > { %v1125_v36 = vpop.f32.mrf.mxu0 }
 0x285   : > { %861 = vst [vmem:[%s1472_s23] sm:$0xff] %v807_v30 }
 0x286   : > { %v809_v37 = vpop.f32.mrf.mxu0 }
 0x287   : > { %v810_v38 = vadd.f32 %v963_v35, %v809_v37 }
 0x288   : > { %v1126_v39 = vpop.f32.mrf.mxu0 }
 0x289   : > { %862 = vst [vmem:[%s1472_s23 + $0x8] sm:$0xff] %v810_v38 }
 0x28a   : > { %v814_v40 = vpop.f32.mrf.mxu0 }
 0x28b   : > { %v815_v41 = vadd.f32 %v963_v35, %v814_v40 }
 0x28c   : > { %v1129_v42 = vpop.f32.mrf.mxu0 }
 0x28d   : > { %863 = vst [vmem:[%s1472_s23 + $0x10] sm:$0xff] %v815_v41 }
 0x28e   : > { %v817_v43 = vpop.f32.mrf.mxu0 }
 0x28f   : > { %v818_v44 = vadd.f32 %v963_v35, %v817_v43 }
 0x290   : > { %v1130_v45 = vpop.f32.mrf.mxu0 }
 0x291   : > { %864 = vst [vmem:[%s1472_s23 + $0x18] sm:$0xff] %v818_v44 }
 0x292   : > { %v822_v46 = vpop.f32.mrf.mxu0 }
 0x293   : > { %v823_v47 = vadd.f32 %v963_v35, %v822_v46 }
 0x294   : > { %v1133_v48 = vpop.f32.mrf.mxu0 }
 0x295   : > { %865 = vst [vmem:[%s1472_s23 + $0x20] sm:$0xff] %v823_v47 }
 0x296   : > { %v825_v49 = vpop.f32.mrf.mxu0 }
 0x297   : > { %v826_v50 = vadd.f32 %v963_v35, %v825_v49 }
 0x298   : > { %v1134_v51 = vpop.f32.mrf.mxu0 }
 0x299   : > { %866 = vst [vmem:[%s1472_s23 + $0x28] sm:$0xff] %v826_v50 }
 0x29a   : > { %v830_v52 = vpop.f32.mrf.mxu0 }
 0x29b   : > { %v831_v53 = vadd.f32 %v963_v35, %v830_v52 }
 0x29c   : > { %v1137_v54 = vpop.f32.mrf.mxu0 }
 0x29d   : > { %867 = vst [vmem:[%s1472_s23 + $0x30] sm:$0xff] %v831_v53 }
 0x29e   : > { %v833_v55 = vpop.f32.mrf.mxu0 }
 0x29f   : > { %v834_v56 = vadd.f32 %v963_v35, %v833_v55 }
 0x2a0   : > { %v1138_v57 = vpop.f32.mrf.mxu0 }
 0x2a1   : > { %868 = vst [vmem:[%s1472_s23 + $0x38] sm:$0xff] %v834_v56 }
 0x2a2   : > { %v838_v58 = vpop.f32.mrf.mxu0 }
 0x2a3   : > { %v839_v59 = vadd.f32 %v963_v35, %v838_v58 }
 0x2a4   : > { %v1141_v60 = vpop.f32.mrf.mxu0 }
 0x2a5   : > { %869 = vst [vmem:[%s1472_s23 + $0x40] sm:$0xff] %v839_v59 }
 0x2a6   : > { %v841_v61 = vpop.f32.mrf.mxu0 }
 0x2a7   : > { %v842_v62 = vadd.f32 %v963_v35, %v841_v61 }
 0x2a8   : > { %v1142_v63 = vpop.f32.mrf.mxu0 }
 0x2a9   : > { %870 = vst [vmem:[%s1472_s23 + $0x48] sm:$0xff] %v842_v62 }
 0x2aa   : > { %v846_v0 = vpop.f32.mrf.mxu0 }
 0x2ab   : > { %v847_v2 = vadd.f32 %v963_v35, %v846_v0 }
 0x2ac   : > { %v1145_v3 = vpop.f32.mrf.mxu0 }
 0x2ad   : > { %871 = vst [vmem:[%s1472_s23 + $0x50] sm:$0xff] %v847_v2 }
 0x2ae   : > { %v849_v4 = vpop.f32.mrf.mxu0 }
 0x2af   : > { %v850_v5 = vadd.f32 %v963_v35, %v849_v4 }
 0x2b0   : > { %v1146_v6 = vpop.f32.mrf.mxu0 }
 0x2b1   : > { %872 = vst [vmem:[%s1472_s23 + $0x58] sm:$0xff] %v850_v5 }
 0x2b2   : > { %v854_v7 = vpop.f32.mrf.mxu0 }
 0x2b3   : > { %v855_v8 = vadd.f32 %v963_v35, %v854_v7 }
 0x2b4   : > { %v1149_v9 = vpop.f32.mrf.mxu0 }
 0x2b5   : > { %873 = vst [vmem:[%s1472_s23 + $0x60] sm:$0xff] %v855_v8 }
 0x2b6   : > { %v857_v10 = vpop.f32.mrf.mxu0 }
 0x2b7   : > { %v858_v11 = vadd.f32 %v963_v35, %v857_v10 }
 0x2b8   : > { %v1150_v12 = vpop.f32.mrf.mxu0 }
 0x2b9   : > { %874 = vst [vmem:[%s1472_s23 + $0x68] sm:$0xff] %v858_v11 }
 0x2ba PF: > { %s17_s24 = sadd.s32 1, %s1214_s24  }
 0x2bb   : > { %p14_p4 = scmp.ge.s32.totalorder %s17_s24, 4  }
 0x2bd   :  { %16 = sbr.rel (!%p14_p4) target bundleno = 1 (0x1), region = 78 }

// kernel: forward.1
= control target key start
LH: loop header
LB: loop body
LE: loop exit
PB: predicated region body
PF: predicated region fallthrough
CT: control target
= control target key end

     0   :  { %s1258_s24 = smov 0   ;;  %s1491_s0 = inlined_call_operand.vmem [shape: bf16[224,128], index: 0, kind: input, shape index: {}]   ;;  %s1492_s1 = inlined_call_operand.vmem [shape: bf16[128,128], index: 1, kind: input, shape index: {}]   ;;  %s1493_s2 = inlined_call_operand.vmem [shape: f32[1,128], index: 2, kind: input, shape index: {}]   ;;  %s1494_s3 = inlined_call_operand.vmem [shape: bf16[128,128], index: 3, kind: input, shape index: {}]   ;;  %s1495_s4 = inlined_call_operand.vmem [shape: f32[1,128], index: 4, kind: input, shape index: {}]   ;;  %s1496_s5 = inlined_call_operand.vmem [shape: bf16[128,128], index: 5, kind: input, shape index: {}]   ;;  %s1497_s6 = inlined_call_operand.vmem [shape: f32[1,128], index: 6, kind: input, shape index: {}]   ;;  %s1498_s7 = inlined_call_operand.vmem [shape: f32[224,128], index: 7, kind: output, shape index: {}]  }
   0x1 LB: > { %s931_s25 = sadd.s32 4294967295, %s1214_s24   ;;  %p935_p0 = scmp.ge.s32.totalorder %s1214_s24, 1  ;;  %s1214_s24 = sphi %s1258_s24, %s17_s24  }
   0x2   : > { %p238_p1 = scmp.lt.s32.totalorder %s1214_s24, 3 }
   0x4   : > { %p239_p2 = pnand %p935_p0, %p238_p1 }
   0x5   : > { %s270_s30 = smul.u32 (!%p239_p2), 14, %s931_s25 }
   0x6   : > { %242 = sbr.rel (%p239_p2) target bundleno = 698 (0x2ba), region = 48 }
   0x7   : > { %p271_p3 = scmp.lt.s32.totalorder (!%p239_p2), %s270_s30, 27 }
   0xb   : > { %v1177_v0 = vld [vmem:[%s1492_s1 + $0x38] sm:$0xff]   ;;  %v1216_v1 = vmov 0.0   ;;  %v1178_v2 = vld [vmem:[%s1492_s1 + $0x30] sm:$0xff]   ;;  %vm1217_vm0 = vmmov 0   ;;  %v1179_v3 = vld [vmem:[%s1492_s1 + $0x28] sm:$0xff]   ;;  %s1500_s30 = smov (!%p271_p3, %s270_s30), 27 }
   0xc   : > { %1019 = vmatprep.subr.bf16.mxu0 %v1216_v1  ;;  %1151 = vmatprep.subr.bf16.mxu1 %v1216_v1  ;;  %s936_s10 = sshll.u32 %s1500_s30, 2  ;;  %v1180_v4 = vld [vmem:[%s1492_s1 + $0x20] sm:$0xff]   ;;  %v1181_v5 = vld [vmem:[%s1492_s1 + $0x18] sm:$0xff]   ;;  %v1182_v6 = vld [vmem:[%s1492_s1 + $0x10] sm:$0xff]  }
   0xd   : > { %1020 = vmatpush3.bf16.msra.mxu0 %v1177_v0  ;;  %1159 = vmatpush3.bf16.msra.mxu1 %v1177_v0  ;;  %s1291_s13 = scalar_lea.vmem %s1491_s0, %s936_s10  ;;  %v1183_v7 = vld [vmem:[%s1492_s1 + $0x8] sm:$0xff]   ;;  %v1184_v8 = vld [vmem:[%s1492_s1] sm:$0xff]   ;;  %v1192_v11 = vld [vmem:[%s1494_s3 + $0x38] sm:$0xff]  }
   0xe   : > { %1021 = vmatprep.subr.bf16.mxu0 %v1216_v1  ;;  %1152 = vmatprep.subr.bf16.mxu1 %v1216_v1  ;;  %v1185_v9 = vld [vmem:[%s1291_s13] sm:$0xff]   ;;  %v1193_v12 = vld [vmem:[%s1494_s3 + $0x30] sm:$0xff]   ;;  %v1186_v13 = vld [vmem:[%s1291_s13 + $0x8] sm:$0xff]  }
   0xf   : > { %1035 = vmatprep.mubr.msk.bf16.mxu0 %vm1217_vm0, %v1216_v1  ;;  %1051 = vmatprep.mubr.msk.bf16.mxu1 %vm1217_vm0, %v1216_v1  ;;  %v1189_v10 = vld [vmem:[%s1291_s13 + $0x20] sm:$0xff]   ;;  %v1190_v14 = vld [vmem:[%s1291_s13 + $0x28] sm:$0xff]   ;;  %v1187_v17 = vld [vmem:[%s1291_s13 + $0x10] sm:$0xff]  }
  0x10   : > { %v1194_v15 = vld [vmem:[%s1494_s3 + $0x28] sm:$0xff]   ;;  %v1195_v16 = vld [vmem:[%s1494_s3 + $0x20] sm:$0xff]   ;;  %v1191_v18 = vld [vmem:[%s1291_s13 + $0x30] sm:$0xff]  }
  0x11   : > { %1022 = vmatpush3.bf16.msra.mxu0 %v1178_v2  ;;  %1160 = vmatpush3.bf16.msra.mxu1 %v1178_v2  ;;  %v1196_v19 = vld [vmem:[%s1494_s3 + $0x18] sm:$0xff]   ;;  %v1197_v21 = vld [vmem:[%s1494_s3 + $0x10] sm:$0xff]   ;;  %v1198_v22 = vld [vmem:[%s1494_s3 + $0x8] sm:$0xff]  }
  0x12   : > { %1023 = vmatprep.subr.bf16.mxu0 %v1216_v1  ;;  %1153 = vmatprep.subr.bf16.mxu1 %v1216_v1  ;;  %v1188_v20 = vld [vmem:[%s1291_s13 + $0x18] sm:$0xff]   ;;  %v1199_v23 = vld [vmem:[%s1494_s3] sm:$0xff]   ;;  %v1201_v25 = vld [vmem:[%s1496_s5 + $0x30] sm:$0xff]   ;;  %s937_s13 = sshll.u32 %s1500_s30, 3 }
  0x13   : > { %v1200_v24 = vld [vmem:[%s1496_s5 + $0x38] sm:$0xff]   ;;  %v1202_v26 = vld [vmem:[%s1496_s5 + $0x28] sm:$0xff]   ;;  %v1203_v27 = vld [vmem:[%s1496_s5 + $0x20] sm:$0xff]   ;;  %s1472_s23 = scalar_lea.vmem %s1498_s7, %s937_s13 }
  0x14   : > { %v1204_v28 = vld [vmem:[%s1496_s5 + $0x18] sm:$0xff]   ;;  %v1205_v29 = vld [vmem:[%s1496_s5 + $0x10] sm:$0xff]   ;;  %v1399_v30 = vld [vmem:[%s1493_s2] ss:$0 sm:$0xff] }
  0x15   : > { %1024 = vmatpush3.bf16.msra.mxu0 %v1179_v3  ;;  %1161 = vmatpush3.bf16.msra.mxu1 %v1179_v3 }
  0x16   : > { %1025 = vmatprep.subr.bf16.mxu0 %v1216_v1  ;;  %1154 = vmatprep.subr.bf16.mxu1 %v1216_v1 }
  0x19   : > { %1026 = vmatpush3.bf16.msra.mxu0 %v1180_v4  ;;  %1162 = vmatpush3.bf16.msra.mxu1 %v1180_v4 }
  0x1a   : > { %1027 = vmatprep.subr.bf16.mxu0 %v1216_v1  ;;  %1155 = vmatprep.subr.bf16.mxu1 %v1216_v1 }
  0x1d   : > { %1028 = vmatpush3.bf16.msra.mxu0 %v1181_v5  ;;  %1163 = vmatpush3.bf16.msra.mxu1 %v1181_v5 }
  0x1e   : > { %1029 = vmatprep.subr.bf16.mxu0 %v1216_v1  ;;  %1156 = vmatprep.subr.bf16.mxu1 %v1216_v1 }
  0x21   : > { %1030 = vmatpush3.bf16.msra.mxu0 %v1182_v6  ;;  %1164 = vmatpush3.bf16.msra.mxu1 %v1182_v6 }
  0x22   : > { %1031 = vmatprep.subr.bf16.mxu0 %v1216_v1  ;;  %1157 = vmatprep.subr.bf16.mxu1 %v1216_v1 }
  0x25   : > { %1032 = vmatpush3.bf16.msra.mxu0 %v1183_v7  ;;  %1165 = vmatpush3.bf16.msra.mxu1 %v1183_v7 }
  0x26   : > { %1033 = vmatprep.subr.bf16.mxu0 %v1216_v1  ;;  %1158 = vmatprep.subr.bf16.mxu1 %v1216_v1 }
  0x29   : > { %1034 = vmatpush3.bf16.msra.mxu0 %v1184_v8  ;;  %1166 = vmatpush3.bf16.msra.mxu1 %v1184_v8 }
  0x2a   : > { %1063 = vmatprep.subr.bf16.mxu1 %v1216_v1  ;;  %1107 = vmatprep.subr.bf16.mxu0 %v1216_v1 }
  0x2c   : > { %1036 = vmatmul.mubr.bf16.vlgmr.msra.gmra.mxu0 %v1185_v9  ;;  %1052 = vmatmul.mubr.bf16.vlgmr.msra.gmra.mxu1 %v1189_v10 }
  0x2d   : > { %1039 = vmatprep.mubr.msk.bf16.mxu0 %vm1217_vm0, %v1216_v1  ;;  %1055 = vmatprep.mubr.msk.bf16.mxu1 %vm1217_vm0, %v1216_v1 }
  0x2e   : > { %1064 = vmatpush3.bf16.msra.mxu1 %v1192_v11  ;;  %1108 = vmatpush3.bf16.msra.mxu0 %v1200_v24 }
  0x2f   : > { %1065 = vmatprep.subr.bf16.mxu1 %v1216_v1  ;;  %1109 = vmatprep.subr.bf16.mxu0 %v1216_v1 }
  0x32   : > { %1066 = vmatpush3.bf16.msra.mxu1 %v1193_v12  ;;  %1110 = vmatpush3.bf16.msra.mxu0 %v1201_v25 }
  0x33   : > { %1067 = vmatprep.subr.bf16.mxu1 %v1216_v1  ;;  %1111 = vmatprep.subr.bf16.mxu0 %v1216_v1 }
  0x34   : > { %1040 = vmatmul.mubr.bf16.gmra.mxu0 %v1186_v13  ;;  %1056 = vmatmul.mubr.bf16.gmra.mxu1 %v1190_v14 }
  0x35   : > { %1043 = vmatprep.mubr.msk.bf16.mxu0 %vm1217_vm0, %v1216_v1  ;;  %1059 = vmatprep.mubr.msk.bf16.mxu1 %vm1217_vm0, %v1216_v1 }
  0x36   : > { %1068 = vmatpush3.bf16.msra.mxu1 %v1194_v15  ;;  %1112 = vmatpush3.bf16.msra.mxu0 %v1202_v26 }
  0x37   : > { %1069 = vmatprep.subr.bf16.mxu1 %v1216_v1  ;;  %1113 = vmatprep.subr.bf16.mxu0 %v1216_v1 }
  0x3a   : > { %1070 = vmatpush3.bf16.msra.mxu1 %v1195_v16  ;;  %1114 = vmatpush3.bf16.msra.mxu0 %v1203_v27 }
  0x3b   : > { %1071 = vmatprep.subr.bf16.mxu1 %v1216_v1  ;;  %1115 = vmatprep.subr.bf16.mxu0 %v1216_v1 }
  0x3c   : > { %1044 = vmatmul.mubr.bf16.gmra.mxu0 %v1187_v17  ;;  %1060 = vmatmul.mubr.bf16.gmra.mxu1 %v1191_v18 }
  0x3d   : > { %1047 = vmatprep.mubr.msk.bf16.mxu0 %vm1217_vm0, %v1216_v1  ;;  %1079 = vmatprep.mubr.msk.bf16.mxu1 %vm1217_vm0, %v1216_v1 }
  0x3e   : > { %1072 = vmatpush3.bf16.msra.mxu1 %v1196_v19  ;;  %1116 = vmatpush3.bf16.msra.mxu0 %v1204_v28 }
  0x3f   : > { %1073 = vmatprep.subr.bf16.mxu1 %v1216_v1  ;;  %1117 = vmatprep.subr.bf16.mxu0 %v1216_v1 }
  0x42   : > { %1074 = vmatpush3.bf16.msra.mxu1 %v1197_v21  ;;  %1118 = vmatpush3.bf16.msra.mxu0 %v1205_v29 }
  0x43   : > { %1075 = vmatprep.subr.bf16.mxu1 %v1216_v1  ;;  %1119 = vmatprep.subr.bf16.mxu0 %v1216_v1 }
  0x44   : > { %1048 = vmatmul.mubr.bf16.gmra.mxu0 %v1188_v20 }
  0x45   : > { %1123 = vmatprep.mubr.msk.bf16.mxu0 %vm1217_vm0, %v1216_v1 }
  0x46   : > { %1076 = vmatpush3.bf16.msra.mxu1 %v1198_v22 }
  0x47   : > { %1077 = vmatprep.subr.bf16.mxu1 %v1216_v1 }
  0x4a   : > { %1078 = vmatpush3.bf16.msra.mxu1 %v1199_v23 }
  0xec   : > { %v444_v31 = vpop.f32.mrf.mxu0  ;;  %v476_v32 = vpop.f32.mrf.mxu1 }
  0xed   : > { %v445_v35 = vadd.f32 %v1399_v30, %v444_v31  ;;  %v477_v15 = vadd.f32 %v1399_v30, %v476_v32  ;;  %v1206_v32 = vld [vmem:[%s1496_s5 + $0x8] sm:$0xff]  }
  0xee   : > { %v1037_v33 = vpop.f32.mrf.mxu0  ;;  %v1053_v34 = vpop.f32.mrf.mxu1  ;;  %1120 = vmatpush3.bf16.msra.mxu0 %v1206_v32 }
  0xef   : > { %v499_v41 = vmax.f32 %v445_v35, 0.0  ;;  %v507_v18 = vmax.f32 %v477_v15, 0.0  ;;  %1121 = vmatprep.subr.bf16.mxu0 %v1216_v1  ;;  %v1207_v33 = vld [vmem:[%s1496_s5] sm:$0xff]  }
  0xf0   : > { %v447_v36 = vpop.f32.mrf.mxu0  ;;  %v479_v37 = vpop.f32.mrf.mxu1 }
  0xf1   : > { %v448_v38 = vadd.f32 %v1399_v30, %v447_v36  ;;  %v480_v17 = vadd.f32 %v1399_v30, %v479_v37 }
  0xf2   : > { %v1038_v39 = vpop.f32.mrf.mxu0  ;;  %v1054_v40 = vpop.f32.mrf.mxu1  ;;  %1122 = vmatpush3.bf16.msra.mxu0 %v1207_v33 }
  0xf3   : > { %v500_v42 = vmax.f32 %v448_v38, 0.0  ;;  %v508_v19 = vmax.f32 %v480_v17, 0.0 }
  0xf4   : > { %v452_v43 = vpop.f32.mrf.mxu0  ;;  %v484_v44 = vpop.f32.mrf.mxu1 }
  0xf5   : > { %v513_v45 = vpack.c.bf16 %v500_v42, %v499_v41  ;;  %v453_v48 = vadd.f32 %v1399_v30, %v452_v43  ;;  %v517_v20 = vpack.c.bf16 %v508_v19, %v507_v18  ;;  %v485_v21 = vadd.f32 %v1399_v30, %v484_v44 }
  0xf6   : > { %v1041_v46 = vpop.f32.mrf.mxu0  ;;  %v1057_v47 = vpop.f32.mrf.mxu1 }
  0xf7   : > { %1080 = vmatmul.mubr.bf16.vlgmr.msra.gmra.mxu1 %v513_v45  ;;  %v501_v54 = vmax.f32 %v453_v48, 0.0  ;;  %v509_v23 = vmax.f32 %v485_v21, 0.0 }
  0xf8   : > { %v455_v49 = vpop.f32.mrf.mxu0  ;;  %1083 = vmatprep.mubr.msk.bf16.mxu1 %vm1217_vm0, %v1216_v1  ;;  %v487_v50 = vpop.f32.mrf.mxu1 }
  0xf9   : > { %v456_v51 = vadd.f32 %v1399_v30, %v455_v49  ;;  %v488_v22 = vadd.f32 %v1399_v30, %v487_v50 }
  0xfa   : > { %v1042_v52 = vpop.f32.mrf.mxu0  ;;  %v1058_v53 = vpop.f32.mrf.mxu1 }
  0xfb   : > { %v502_v55 = vmax.f32 %v456_v51, 0.0  ;;  %v510_v24 = vmax.f32 %v488_v22, 0.0 }
  0xfc   : > { %v460_v56 = vpop.f32.mrf.mxu0  ;;  %v492_v57 = vpop.f32.mrf.mxu1 }
  0xfd   : > { %v514_v58 = vpack.c.bf16 %v502_v55, %v501_v54  ;;  %v461_v61 = vadd.f32 %v1399_v30, %v460_v56  ;;  %v518_v25 = vpack.c.bf16 %v510_v24, %v509_v23  ;;  %v493_v26 = vadd.f32 %v1399_v30, %v492_v57 }
  0xfe   : > { %v1045_v59 = vpop.f32.mrf.mxu0  ;;  %v1061_v60 = vpop.f32.mrf.mxu1 }
  0xff   : > { %1084 = vmatmul.mubr.bf16.gmra.mxu1 %v514_v58  ;;  %v503_v4 = vmax.f32 %v461_v61, 0.0  ;;  %v511_v28 = vmax.f32 %v493_v26, 0.0 }
 0x100   : > { %v463_v62 = vpop.f32.mrf.mxu0  ;;  %1087 = vmatprep.mubr.msk.bf16.mxu1 %vm1217_vm0, %v1216_v1  ;;  %v495_v63 = vpop.f32.mrf.mxu1 }
 0x101   : > { %v464_v0 = vadd.f32 %v1399_v30, %v463_v62  ;;  %v496_v27 = vadd.f32 %v1399_v30, %v495_v63 }
 0x102   : > { %v1046_v2 = vpop.f32.mrf.mxu0  ;;  %v1062_v3 = vpop.f32.mrf.mxu1 }
 0x103   : > { %v504_v5 = vmax.f32 %v464_v0, 0.0  ;;  %v512_v29 = vmax.f32 %v496_v27, 0.0 }
 0x104   : > { %v468_v6 = vpop.f32.mrf.mxu0 }
 0x105   : > { %v515_v7 = vpack.c.bf16 %v504_v5, %v503_v4  ;;  %v469_v9 = vadd.f32 %v1399_v30, %v468_v6  ;;  %v519_v31 = vpack.c.bf16 %v512_v29, %v511_v28 }
 0x106   : > { %v1049_v8 = vpop.f32.mrf.mxu0 }
 0x107   : > { %1088 = vmatmul.mubr.bf16.gmra.mxu1 %v515_v7  ;;  %v505_v13 = vmax.f32 %v469_v9, 0.0 }
 0x108   : > { %v471_v10 = vpop.f32.mrf.mxu0  ;;  %1091 = vmatprep.mubr.msk.bf16.mxu1 %vm1217_vm0, %v1216_v1 }
 0x109   : > { %v472_v11 = vadd.f32 %v1399_v30, %v471_v10  ;;  %v1437_v30 = vld [vmem:[%s1495_s4] ss:$0 sm:$0xff] }
 0x10a   : > { %v1050_v12 = vpop.f32.mrf.mxu0 }
 0x10b   : > { %v506_v14 = vmax.f32 %v472_v11, 0.0 }
 0x10d   : > { %v516_v16 = vpack.c.bf16 %v506_v14, %v505_v13 }
 0x10f   : > { %1092 = vmatmul.mubr.bf16.gmra.mxu1 %v516_v16 }
 0x110   : > { %1095 = vmatprep.mubr.msk.bf16.mxu1 %vm1217_vm0, %v1216_v1 }
 0x117   : > { %1096 = vmatmul.mubr.bf16.gmra.mxu1 %v517_v20 }
 0x118   : > { %1099 = vmatprep.mubr.msk.bf16.mxu1 %vm1217_vm0, %v1216_v1 }
 0x11f   : > { %1100 = vmatmul.mubr.bf16.gmra.mxu1 %v518_v25 }
 0x120   : > { %1103 = vmatprep.mubr.msk.bf16.mxu1 %vm1217_vm0, %v1216_v1 }
 0x127   : > { %1104 = vmatmul.mubr.bf16.gmra.mxu1 %v519_v31 }
 0x1b7   : > { %v625_v34 = vpop.f32.mrf.mxu1 }
 0x1b8   : > { %v626_v36 = vadd.f32 %v1437_v30, %v625_v34 }
 0x1b9   : > { %v1081_v35 = vpop.f32.mrf.mxu1 }
 0x1ba   : > { %v680_v40 = vmax.f32 %v626_v36, 0.0  ;;  %v963_v35 = vld [vmem:[%s1497_s6] ss:$0 sm:$0xff] }
 0x1bb   : > { %v628_v37 = vpop.f32.mrf.mxu1 }
 0x1bc   : > { %v629_v38 = vadd.f32 %v1437_v30, %v628_v37 }
 0x1bd   : > { %v1082_v39 = vpop.f32.mrf.mxu1 }
 0x1be   : > { %v681_v41 = vmax.f32 %v629_v38, 0.0 }
 0x1bf   : > { %v633_v42 = vpop.f32.mrf.mxu1 }
 0x1c0   : > { %v694_v43 = vpack.c.bf16 %v681_v41, %v680_v40  ;;  %v634_v45 = vadd.f32 %v1437_v30, %v633_v42 }
 0x1c1   : > { %v1085_v44 = vpop.f32.mrf.mxu1 }
 0x1c2   : > { %1124 = vmatmul.mubr.bf16.vlgmr.msra.gmra.mxu0 %v694_v43  ;;  %v682_v49 = vmax.f32 %v634_v45, 0.0 }
 0x1c3   : > { %v636_v46 = vpop.f32.mrf.mxu1  ;;  %1127 = vmatprep.mubr.msk.bf16.mxu0 %vm1217_vm0, %v1216_v1 }
 0x1c4   : > { %v637_v47 = vadd.f32 %v1437_v30, %v636_v46 }
 0x1c5   : > { %v1086_v48 = vpop.f32.mrf.mxu1 }
 0x1c6   : > { %v683_v50 = vmax.f32 %v637_v47, 0.0 }
 0x1c7   : > { %v641_v51 = vpop.f32.mrf.mxu1 }
 0x1c8   : > { %v695_v52 = vpack.c.bf16 %v683_v50, %v682_v49  ;;  %v642_v54 = vadd.f32 %v1437_v30, %v641_v51 }
 0x1c9   : > { %v1089_v53 = vpop.f32.mrf.mxu1 }
 0x1ca   : > { %1128 = vmatmul.mubr.bf16.gmra.mxu0 %v695_v52  ;;  %v684_v58 = vmax.f32 %v642_v54, 0.0 }
 0x1cb   : > { %v644_v55 = vpop.f32.mrf.mxu1  ;;  %1131 = vmatprep.mubr.msk.bf16.mxu0 %vm1217_vm0, %v1216_v1 }
 0x1cc   : > { %v645_v56 = vadd.f32 %v1437_v30, %v644_v55 }
 0x1cd   : > { %v1090_v57 = vpop.f32.mrf.mxu1 }
 0x1ce   : > { %v685_v59 = vmax.f32 %v645_v56, 0.0 }
 0x1cf   : > { %v649_v60 = vpop.f32.mrf.mxu1 }
 0x1d0   : > { %v696_v61 = vpack.c.bf16 %v685_v59, %v684_v58  ;;  %v650_v63 = vadd.f32 %v1437_v30, %v649_v60 }
 0x1d1   : > { %v1093_v62 = vpop.f32.mrf.mxu1 }
 0x1d2   : > { %1132 = vmatmul.mubr.bf16.gmra.mxu0 %v696_v61  ;;  %v686_v4 = vmax.f32 %v650_v63, 0.0 }
 0x1d3   : > { %v652_v0 = vpop.f32.mrf.mxu1  ;;  %1135 = vmatprep.mubr.msk.bf16.mxu0 %vm1217_vm0, %v1216_v1 }
 0x1d4   : > { %v653_v2 = vadd.f32 %v1437_v30, %v652_v0 }
 0x1d5   : > { %v1094_v3 = vpop.f32.mrf.mxu1 }
 0x1d6   : > { %v687_v5 = vmax.f32 %v653_v2, 0.0 }
 0x1d7   : > { %v657_v6 = vpop.f32.mrf.mxu1 }
 0x1d8   : > { %v697_v7 = vpack.c.bf16 %v687_v5, %v686_v4  ;;  %v658_v9 = vadd.f32 %v1437_v30, %v657_v6 }
 0x1d9   : > { %v1097_v8 = vpop.f32.mrf.mxu1 }
 0x1da   : > { %1136 = vmatmul.mubr.bf16.gmra.mxu0 %v697_v7  ;;  %v688_v13 = vmax.f32 %v658_v9, 0.0 }
 0x1db   : > { %v660_v10 = vpop.f32.mrf.mxu1  ;;  %1139 = vmatprep.mubr.msk.bf16.mxu0 %vm1217_vm0, %v1216_v1 }
 0x1dc   : > { %v661_v11 = vadd.f32 %v1437_v30, %v660_v10 }
 0x1dd   : > { %v1098_v12 = vpop.f32.mrf.mxu1 }
 0x1de   : > { %v689_v14 = vmax.f32 %v661_v11, 0.0 }
 0x1df   : > { %v665_v15 = vpop.f32.mrf.mxu1 }
 0x1e0   : > { %v698_v16 = vpack.c.bf16 %v689_v14, %v688_v13  ;;  %v666_v18 = vadd.f32 %v1437_v30, %v665_v15 }
 0x1e1   : > { %v1101_v17 = vpop.f32.mrf.mxu1 }
 0x1e2   : > { %1140 = vmatmul.mubr.bf16.gmra.mxu0 %v698_v16  ;;  %v690_v22 = vmax.f32 %v666_v18, 0.0 }
 0x1e3   : > { %v668_v19 = vpop.f32.mrf.mxu1  ;;  %1143 = vmatprep.mubr.msk.bf16.mxu0 %vm1217_vm0, %v1216_v1 }
 0x1e4   : > { %v669_v20 = vadd.f32 %v1437_v30, %v668_v19 }
 0x1e5   : > { %v1102_v21 = vpop.f32.mrf.mxu1 }
 0x1e6   : > { %v691_v23 = vmax.f32 %v669_v20, 0.0 }
 0x1e7   : > { %v673_v24 = vpop.f32.mrf.mxu1 }
 0x1e8   : > { %v699_v25 = vpack.c.bf16 %v691_v23, %v690_v22  ;;  %v674_v27 = vadd.f32 %v1437_v30, %v673_v24 }
 0x1e9   : > { %v1105_v26 = vpop.f32.mrf.mxu1 }
 0x1ea   : > { %1144 = vmatmul.mubr.bf16.gmra.mxu0 %v699_v25  ;;  %v692_v32 = vmax.f32 %v674_v27, 0.0 }
 0x1eb   : > { %v676_v28 = vpop.f32.mrf.mxu1  ;;  %1147 = vmatprep.mubr.msk.bf16.mxu0 %vm1217_vm0, %v1216_v1 }
 0x1ec   : > { %v677_v29 = vadd.f32 %v1437_v30, %v676_v28 }
 0x1ed   : > { %v1106_v31 = vpop.f32.mrf.mxu1 }
 0x1ee   : > { %v693_v33 = vmax.f32 %v677_v29, 0.0 }
 0x1f0   : > { %v700_v34 = vpack.c.bf16 %v693_v33, %v692_v32 }
 0x1f2   : > { %1148 = vmatmul.mubr.bf16.gmra.mxu0 %v700_v34 }
 0x282   : > { %v806_v1 = vpop.f32.mrf.mxu0 }
 0x283   : > { %v807_v30 = vadd.f32 %v963_v35, %v806_v1 }
 0x284   : > { %v1125_v36 = vpop.f32.mrf.mxu0 }
 0x285   : > { %861 = vst [vmem:[%s1472_s23] sm:$0xff] %v807_v30 }
 0x286   : > { %v809_v37 = vpop.f32.mrf.mxu0 }
 0x287   : > { %v810_v38 = vadd.f32 %v963_v35, %v809_v37 }
 0x288   : > { %v1126_v39 = vpop.f32.mrf.mxu0 }
 0x289   : > { %862 = vst [vmem:[%s1472_s23 + $0x8] sm:$0xff] %v810_v38 }
 0x28a   : > { %v814_v40 = vpop.f32.mrf.mxu0 }
 0x28b   : > { %v815_v41 = vadd.f32 %v963_v35, %v814_v40 }
 0x28c   : > { %v1129_v42 = vpop.f32.mrf.mxu0 }
 0x28d   : > { %863 = vst [vmem:[%s1472_s23 + $0x10] sm:$0xff] %v815_v41 }
 0x28e   : > { %v817_v43 = vpop.f32.mrf.mxu0 }
 0x28f   : > { %v818_v44 = vadd.f32 %v963_v35, %v817_v43 }
 0x290   : > { %v1130_v45 = vpop.f32.mrf.mxu0 }
 0x291   : > { %864 = vst [vmem:[%s1472_s23 + $0x18] sm:$0xff] %v818_v44 }
 0x292   : > { %v822_v46 = vpop.f32.mrf.mxu0 }
 0x293   : > { %v823_v47 = vadd.f32 %v963_v35, %v822_v46 }
 0x294   : > { %v1133_v48 = vpop.f32.mrf.mxu0 }
 0x295   : > { %865 = vst [vmem:[%s1472_s23 + $0x20] sm:$0xff] %v823_v47 }
 0x296   : > { %v825_v49 = vpop.f32.mrf.mxu0 }
 0x297   : > { %v826_v50 = vadd.f32 %v963_v35, %v825_v49 }
 0x298   : > { %v1134_v51 = vpop.f32.mrf.mxu0 }
 0x299   : > { %866 = vst [vmem:[%s1472_s23 + $0x28] sm:$0xff] %v826_v50 }
 0x29a   : > { %v830_v52 = vpop.f32.mrf.mxu0 }
 0x29b   : > { %v831_v53 = vadd.f32 %v963_v35, %v830_v52 }
 0x29c   : > { %v1137_v54 = vpop.f32.mrf.mxu0 }
 0x29d   : > { %867 = vst [vmem:[%s1472_s23 + $0x30] sm:$0xff] %v831_v53 }
 0x29e   : > { %v833_v55 = vpop.f32.mrf.mxu0 }
 0x29f   : > { %v834_v56 = vadd.f32 %v963_v35, %v833_v55 }
 0x2a0   : > { %v1138_v57 = vpop.f32.mrf.mxu0 }
 0x2a1   : > { %868 = vst [vmem:[%s1472_s23 + $0x38] sm:$0xff] %v834_v56 }
 0x2a2   : > { %v838_v58 = vpop.f32.mrf.mxu0 }
 0x2a3   : > { %v839_v59 = vadd.f32 %v963_v35, %v838_v58 }
 0x2a4   : > { %v1141_v60 = vpop.f32.mrf.mxu0 }
 0x2a5   : > { %869 = vst [vmem:[%s1472_s23 + $0x40] sm:$0xff] %v839_v59 }
 0x2a6   : > { %v841_v61 = vpop.f32.mrf.mxu0 }
 0x2a7   : > { %v842_v62 = vadd.f32 %v963_v35, %v841_v61 }
 0x2a8   : > { %v1142_v63 = vpop.f32.mrf.mxu0 }
 0x2a9   : > { %870 = vst [vmem:[%s1472_s23 + $0x48] sm:$0xff] %v842_v62 }
 0x2aa   : > { %v846_v0 = vpop.f32.mrf.mxu0 }
 0x2ab   : > { %v847_v2 = vadd.f32 %v963_v35, %v846_v0 }
 0x2ac   : > { %v1145_v3 = vpop.f32.mrf.mxu0 }
 0x2ad   : > { %871 = vst [vmem:[%s1472_s23 + $0x50] sm:$0xff] %v847_v2 }
 0x2ae   : > { %v849_v4 = vpop.f32.mrf.mxu0 }
 0x2af   : > { %v850_v5 = vadd.f32 %v963_v35, %v849_v4 }
 0x2b0   : > { %v1146_v6 = vpop.f32.mrf.mxu0 }
 0x2b1   : > { %872 = vst [vmem:[%s1472_s23 + $0x58] sm:$0xff] %v850_v5 }
 0x2b2   : > { %v854_v7 = vpop.f32.mrf.mxu0 }
 0x2b3   : > { %v855_v8 = vadd.f32 %v963_v35, %v854_v7 }
 0x2b4   : > { %v1149_v9 = vpop.f32.mrf.mxu0 }
 0x2b5   : > { %873 = vst [vmem:[%s1472_s23 + $0x60] sm:$0xff] %v855_v8 }
 0x2b6   : > { %v857_v10 = vpop.f32.mrf.mxu0 }
 0x2b7   : > { %v858_v11 = vadd.f32 %v963_v35, %v857_v10 }
 0x2b8   : > { %v1150_v12 = vpop.f32.mrf.mxu0 }
 0x2b9   : > { %874 = vst [vmem:[%s1472_s23 + $0x68] sm:$0xff] %v858_v11 }
 0x2ba PF: > { %s17_s24 = sadd.s32 1, %s1214_s24  }
 0x2bb   : > { %p14_p4 = scmp.ge.s32.totalorder %s17_s24, 4  }
 0x2bd   :  { %16 = sbr.rel (!%p14_p4) target bundleno = 1 (0x1), region = 78 }

</bundles_post_ra>
